<compile_context>
chip_gen: v5e
topology: v5e:2x2
jax: 0.10.0
libtpu: 0.0.40
codegen_flags: <defaults>
</compile_context>

<pallas_src>
import jax
import jax.numpy as jnp
from jax.experimental import pallas as pl
from jax.experimental.pallas import tpu as pltpu


def _energy_kernel(code_ref, req_ref, w1_ref, b1_ref, w2_ref, b2_ref, o_ref):
    # Layer 1: single K=2E MXU matmul on the concatenated tile, f32 accumulation.
    x = jnp.concatenate([code_ref[...], req_ref[...]], axis=-1)        # (tb, 2E)
    h = jnp.dot(x, w1_ref[...], preferred_element_type=jnp.float32)    # (tb, H) f32
    h = jnp.maximum(h + b1_ref[...], 0.0)                              # ReLU
    # Layer 2 (H -> 1): VPU multiply + XLU lane reduction instead of an N=1 matmul.
    e = jnp.sum(h * w2_ref[...], axis=-1) + b2_ref[0]                  # (tb,)
    # Lane-dense store: one (1, tb) row per grid step.
    o_ref[...] = e.reshape(1, -1).astype(o_ref.dtype)


def _round_up(x, m):
    return ((x + m - 1) // m) * m


def _choose_tile(batch, tb):
    """Pick (tile, padded_batch).

    * tiny batches  -> a single full-extent tile (legal block = full dims)
    * large batches -> a 128-aligned tile (lane-dense output block is legal)
      with >= 2 grid steps so v7x's two TensorCores both get work.
    """
    tb = max(128, (tb // 128) * 128)
    b_pad = _round_up(batch, 8)
    if b_pad < 256:
        return b_pad, b_pad
    half = max(128, (_round_up(b_pad, 128) // 2) // 128 * 128)
    tile = min(tb, half)
    return tile, _round_up(b_pad, tile)


def energy_model_forward(code_emb, req_emb, params, *, tb=512,
                         compute_dtype=jnp.float32):
    """Pallas implementation of EnergyModel.forward.

    code_emb, req_emb: (B, E) float32
    params: dict with w1 (2E, H), b1 (H,), w2 (H, 1), b2 (1,)
    compute_dtype: dtype of the matmul operands (jnp.bfloat16 recommended on
        v5e; accumulation stays f32 either way).
    returns: (B,) float32 energies
    """
    B, E = code_emb.shape
    H = params["b1"].size

    w1 = params["w1"].astype(compute_dtype)        # (2E, H), resident in VMEM
    b1 = params["b1"].reshape(1, H)                # (1, H) f32
    w2 = params["w2"].reshape(1, H)                # W2^T row, (1, H) f32
    b2 = params["b2"].reshape(1)                   # (1,) f32 scalar -> SMEM

    tile, b_pad = _choose_tile(B, tb)
    code = code_emb.astype(compute_dtype)
    req = req_emb.astype(compute_dtype)
    if b_pad != B:
        code = jnp.pad(code, ((0, b_pad - B), (0, 0)))
        req = jnp.pad(req, ((0, b_pad - B), (0, 0)))

    grid = (b_pad // tile,)
    itemsize = jnp.dtype(compute_dtype).itemsize
    cost = pl.CostEstimate(
        flops=2 * b_pad * (2 * E) * H + 4 * b_pad * H,
        transcendentals=0,
        bytes_accessed=(2 * b_pad * E * itemsize + w1.size * itemsize
                        + (b1.size + w2.size + b2.size + b_pad) * 4),
    )

    out = pl.pallas_call(
        _energy_kernel,
        out_shape=jax.ShapeDtypeStruct((1, b_pad), jnp.float32),
        grid_spec=pltpu.PrefetchScalarGridSpec(
            num_scalar_prefetch=0,
            grid=grid,
            in_specs=[
                pl.BlockSpec((tile, E), lambda i: (i, 0)),          # code rows
                pl.BlockSpec((tile, E), lambda i: (i, 0)),          # req rows
                pl.BlockSpec((2 * E, H), lambda i: (0, 0)),         # W1 (resident)
                pl.BlockSpec((1, H), lambda i: (0, 0)),             # b1 (resident)
                pl.BlockSpec((1, H), lambda i: (0, 0)),             # W2^T row
                pl.BlockSpec(memory_space=pltpu.MemorySpace.SMEM),  # b2 scalar
            ],
            out_specs=pl.BlockSpec((1, tile), lambda i: (0, i)),
        ),
        compiler_params=pltpu.CompilerParams(
            dimension_semantics=("parallel",)),
        cost_estimate=cost,
    )(code, req, w1, b1, w2, b2)

    return out[0, :B]


def init_params(key, embed_dim=128, hidden_dim=128):
    k1, k2, k3, k4 = jax.random.split(key, 4)
    # Deterministic synthetic init (Kaiming-ish uniform like nn.Linear default).
    lim1 = 1.0 / jnp.sqrt(2.0 * embed_dim)
    lim2 = 1.0 / jnp.sqrt(float(hidden_dim))
    return {
        "w1": jax.random.uniform(k1, (2 * embed_dim, hidden_dim),
                                 jnp.float32, -lim1, lim1),
        "b1": jax.random.uniform(k2, (hidden_dim,), jnp.float32, -lim1, lim1),
        "w2": jax.random.uniform(k3, (hidden_dim, 1), jnp.float32, -lim2, lim2),
        "b2": jax.random.uniform(k4, (1,), jnp.float32, -lim2, lim2),
    }


if __name__ == "__main__":
    embed_dim = 128
    hidden_dim = 128

    key = jax.random.PRNGKey(0)
    kp, kc, kr = jax.random.split(key, 3)
    params = init_params(kp, embed_dim, hidden_dim)

    def reference(code, req):
        combined = jnp.concatenate([code, req], axis=-1)
        h = jnp.maximum(combined @ params["w1"] + params["b1"], 0.0)
        return (h @ params["w2"] + params["b2"])[:, 0]

    # (1) batch that splits into >= 2 lane-aligned tiles (megacore path).
    B = 256
    code_emb = jax.random.normal(kc, (B, embed_dim), jnp.float32)
    req_emb = jax.random.normal(kr, (B, embed_dim), jnp.float32)
    energy = jax.block_until_ready(energy_model_forward(code_emb, req_emb, params))
    assert energy.shape == (B,)
    assert jnp.allclose(energy, reference(code_emb, req_emb), atol=1e-4, rtol=1e-4)

    # (2) ragged small batch (exercises zero-padding / single full tile).
    e_small = jax.block_until_ready(
        energy_model_forward(code_emb[:10], req_emb[:10], params))
    assert e_small.shape == (10,)
    assert jnp.allclose(e_small, reference(code_emb[:10], req_emb[:10]),
                        atol=1e-4, rtol=1e-4)

    # (3) bf16 MXU operands (v5e recommendation), f32 accumulation -> looser tol.
    e_bf16 = jax.block_until_ready(
        energy_model_forward(code_emb, req_emb, params,
                             compute_dtype=jnp.bfloat16))
    assert jnp.allclose(e_bf16, reference(code_emb, req_emb), atol=5e-2, rtol=5e-2)

    print("KERNEL_OK")
</pallas_src>

<mosaic_0001>
module attributes {stable_mosaic.version = 11 : i64} {
  func.func @_energy_kernel(%arg0: i32, %arg1: memref<128x128xf32, #tpu.memory_space<vmem>>, %arg2: memref<128x128xf32, #tpu.memory_space<vmem>>, %arg3: memref<256x128xf32, #tpu.memory_space<vmem>>, %arg4: memref<1x128xf32, #tpu.memory_space<vmem>>, %arg5: memref<1x128xf32, #tpu.memory_space<vmem>>, %arg6: memref<1xf32, #tpu.memory_space<smem>>, %arg7: memref<1x128xf32, #tpu.memory_space<vmem>>) attributes {dimension_semantics = [#tpu.dimension_semantics<parallel>], iteration_bounds = array<i64: 2>, scalar_prefetch = 0 : i64, scratch_operands = 0 : i64, tpu.core_type = #tpu.core_type<tc>, window_params = [{transform_indices = @transform_0, window_bounds = array<i64: 128, 128>}, {transform_indices = @transform_1, window_bounds = array<i64: 128, 128>}, {pipeline_mode = #tpu.pipeline_mode<synchronous>, transform_indices = @transform_2, window_bounds = array<i64: 256, 128>}, {pipeline_mode = #tpu.pipeline_mode<synchronous>, transform_indices = @transform_3, window_bounds = array<i64: 1, 128>}, {pipeline_mode = #tpu.pipeline_mode<synchronous>, transform_indices = @transform_4, window_bounds = array<i64: 1, 128>}, {transform_indices = @transform_5, window_bounds = array<i64: 1>}, {transform_indices = @transform_6, window_bounds = array<i64: 1, 128>}]} {
    %c0 = arith.constant 0 : index
    %c0_0 = arith.constant 0 : index
    %0 = vector.load %arg1[%c0, %c0_0] : memref<128x128xf32, #tpu.memory_space<vmem>>, vector<128x128xf32>
    %c0_1 = arith.constant 0 : index
    %c0_2 = arith.constant 0 : index
    %1 = vector.load %arg2[%c0_1, %c0_2] : memref<128x128xf32, #tpu.memory_space<vmem>>, vector<128x128xf32>
    %2 = tpu.concatenate %0, %1 in 1 : vector<128x128xf32>, vector<128x128xf32> -> vector<128x256xf32>
    %c0_3 = arith.constant 0 : index
    %c0_4 = arith.constant 0 : index
    %3 = vector.load %arg3[%c0_3, %c0_4] : memref<256x128xf32, #tpu.memory_space<vmem>>, vector<256x128xf32>
    %cst = arith.constant dense<0.000000e+00> : vector<128x128xf32>
    %4 = tpu.matmul %2, %3, %cst {dimension_numbers = #tpu.dot_dimension_numbers<[1], [0], [0], [1], [0, 0, 1, 1], [], []>} : vector<128x256xf32>, vector<256x128xf32>, vector<128x128xf32> -> vector<128x128xf32>
    %c0_5 = arith.constant 0 : index
    %c0_6 = arith.constant 0 : index
    %5 = vector.load %arg4[%c0_5, %c0_6] : memref<1x128xf32, #tpu.memory_space<vmem>>, vector<1x128xf32>
    %6 = vector.broadcast %5 : vector<1x128xf32> to vector<128x128xf32>
    %7 = arith.addf %4, %6 : vector<128x128xf32>
    %cst_7 = arith.constant 0.000000e+00 : f32
    %8 = vector.broadcast %cst_7 : f32 to vector<128x128xf32>
    %9 = arith.maximumf %7, %8 : vector<128x128xf32>
    %c0_8 = arith.constant 0 : index
    %c0_9 = arith.constant 0 : index
    %10 = vector.load %arg5[%c0_8, %c0_9] : memref<1x128xf32, #tpu.memory_space<vmem>>, vector<1x128xf32>
    %11 = vector.broadcast %10 : vector<1x128xf32> to vector<128x128xf32>
    %12 = arith.mulf %9, %11 : vector<128x128xf32>
    %cst_10 = arith.constant dense<0.000000e+00> : vector<128xf32>
    %13 = vector.multi_reduction <add>, %12, %cst_10 [1] : vector<128x128xf32> to vector<128xf32>
    %c0_11 = arith.constant 0 : index
    %14 = memref.load %arg6[%c0_11] : memref<1xf32, #tpu.memory_space<smem>>
    %15 = vector.broadcast %14 : f32 to vector<128xf32>
    %16 = arith.addf %13, %15 : vector<128xf32>
    %17 = vector.shape_cast %16 : vector<128xf32> to vector<1x128xf32>
    %c0_12 = arith.constant 0 : index
    %c0_13 = arith.constant 0 : index
    %18 = vector.load %arg7[%c0_12, %c0_13] : memref<1x128xf32, #tpu.memory_space<vmem>>, vector<1x128xf32>
    tpu.vector_store %arg7[%c0_12, %c0_13], %17 {strides = array<i32>} : memref<1x128xf32, #tpu.memory_space<vmem>>, vector<1x128xf32>,
    return
  }
  func.func @transform_0(%arg0: i32) -> (i32, i32) {
    %c0_i32 = arith.constant 0 : i32
    %c0_i32_0 = arith.constant 0 : i32
    return %arg0, %c0_i32 : i32, i32
  }
  func.func @transform_1(%arg0: i32) -> (i32, i32) {
    %c0_i32 = arith.constant 0 : i32
    %c0_i32_0 = arith.constant 0 : i32
    return %arg0, %c0_i32 : i32, i32
  }
  func.func @transform_2(%arg0: i32) -> (i32, i32) {
    %c0_i32 = arith.constant 0 : i32
    %c0_i32_0 = arith.constant 0 : i32
    %c0_i32_1 = arith.constant 0 : i32
    return %c0_i32, %c0_i32_0 : i32, i32
  }
  func.func @transform_3(%arg0: i32) -> (i32, i32) {
    %c0_i32 = arith.constant 0 : i32
    %c0_i32_0 = arith.constant 0 : i32
    %c0_i32_1 = arith.constant 0 : i32
    return %c0_i32, %c0_i32_0 : i32, i32
  }
  func.func @transform_4(%arg0: i32) -> (i32, i32) {
    %c0_i32 = arith.constant 0 : i32
    %c0_i32_0 = arith.constant 0 : i32
    %c0_i32_1 = arith.constant 0 : i32
    return %c0_i32, %c0_i32_0 : i32, i32
  }
  func.func @transform_5(%arg0: i32) -> i32 {
    %c0_i32 = arith.constant 0 : i32
    %c0_i32_0 = arith.constant 0 : i32
    return %c0_i32 : i32
  }
  func.func @transform_6(%arg0: i32) -> (i32, i32) {
    %c0_i32 = arith.constant 0 : i32
    %c0_i32_0 = arith.constant 0 : i32
    return %c0_i32, %arg0 : i32, i32
  }
}

</mosaic_0001>

<bundles_post_ra>
// kernel: tpu_custom_call.1
= control target key start
LH: loop header
LB: loop body
LE: loop exit
PB: predicated region body
PF: predicated region fallthrough
CT: control target
= control target key end

     0   :  { %s1421_s0 = inlined_call_operand.hbm [shape: f32[256,128], index: 0, kind: input, shape index: {}]   ;;  %s1422_s1 = inlined_call_operand.hbm [shape: f32[256,128], index: 1, kind: input, shape index: {}]   ;;  %s1423_s2 = inlined_call_operand.hbm [shape: f32[256,128], index: 2, kind: input, shape index: {}]   ;;  %s1424_s3 = inlined_call_operand.vmem [shape: f32[1,128], index: 3, kind: input, shape index: {}]   ;;  %s1425_s4 = inlined_call_operand.vmem [shape: f32[1,128], index: 4, kind: input, shape index: {}]   ;;  %s1426_s5 = inlined_call_operand.<no memory space> [shape: f32[1], index: 5, kind: input, shape index: {}]   ;;  %s1427_s6 = inlined_call_operand.hbm [shape: f32[1,256], index: 6, kind: output, shape index: {}]  }
   0x1   :  { %1432 = sst [smem:[#allocation15_spill]] %s1421_s0 }
   0x2   :  { %1433 = sst [smem:[#allocation16_spill]] %s1423_s2 }
   0x3   :  { %11 = sst [smem:[#allocation2]] %s1426_s5 }
   0x4   :  { %12 = vsyncpa [#allocation4], 0 }
   0x5   :  { %14 = vsyncpa [#allocation4 + $0x1], 0 }
   0x6   :  { %15 = vsyncpa [#allocation7], 0 }
   0x7   :  { %17 = vsyncpa [#allocation7 + $0x1], 0 }
   0x8   :  { %18 = vsyncpa [#allocation5], 0 }
   0x9   :  { %20 = vsyncpa [#allocation5 + $0x1], 0  ;;  %s1131_s23 = smov 0   ;;  %s1133_s24 = smov 0  }
   0xa   :  { %s1135_s25 = smov 0   ;;  %s1137_s26 = smov 0  }
   0xb LB: > { %s1152_s5 = sadd.s32 4294967295, %s1088_s26   ;;  %s808_s27 = sadd.s32 4294967294, %s1088_s26   ;;  %s1088_s26 = sphi %s1137_s26, %s1449_s26   ;;  %s1084_s25 = sphi %s1135_s25, %s1448_s25   ;;  %s1080_s24 = sphi %s1133_s24, %s1447_s24   ;;  %s1076_s23 = sphi %s1131_s23, %s1446_s23  }
   0xc   : > { %p46_p0 = scmp.ne.s32.totalorder %s1080_s24, %s1076_s23  ;;  %p47_p1 = scmp.eq.s32.totalorder %s1152_s5, 0 }
   0xd   : > { %p180_p2 = scmp.eq.s32.totalorder %s1152_s5, 1  ;;  %p186_p3 = scmp.eq.s32.totalorder %s808_s27, 1 }
   0xe   : > { %p1161_p4 = por %p47_p1, %p46_p0  ;;  %p809_p5 = scmp.ge.s32.totalorder %s1088_s26, 1 }
   0xf   : > { %p1166_p6 = por %p186_p3, %p46_p0  ;;  %p193_p7 = scmp.lt.s32.totalorder %s1088_s26, 3 }
  0x10   : > { %s1436_s2 = sld [smem:[#allocation16_spill]]  ;;  %s1090_s10 = smov [#allocation8]  }
  0x11   : > { %p1174_p8 = pnand %p809_p5, %p193_p7  ;;  %s206_s11 = sshll.u32 %s1090_s10, 4  ;;  %s207_s11 = int_to_ptr.vmem [resolvable:$true] %s206_s11 }
  0x12   : > { %s1184_s12 = sadd.s32 1, %s1088_s26   ;;  %s1428_s13 = smov 128  }
  0x13   : > { %p868_p9 = pneg %p1174_p8  ;;  %s1430_s14 = smov 8  }
  0x14   : > { %s30_s15 = ssub.s32 %s1088_s26, %s1184_s12  ;;  %s33_s16 = sadd.s32 1, %s1084_s25 }
  0x15   : > { %p869_p10 = pnand %p868_p9, %p47_p1  ;;  %p31_p12 = scmp.eq.s32.totalorder %s30_s15, 0 }
  0x16   : > { %s204_s8 = sshll.u32 %s1436_s2, 4  ;;  %p40_p13 = scmp.ne.s32.totalorder %s1084_s25, %s1080_s24  ;;  %s205_s8 = int_to_ptr.hbm [resolvable:$true] %s204_s8 }
  0x17   : > { %871 = dma.hbm_to_vmem [thread:$0]  (!%p869_p10), %s205_s8, 4096, %s207_s11, [#allocation7], %s1428_s13, %s1428_s13, %s1430_s14  }
  0x18   : > { %p41_p0 = scmp.eq.s32.totalorder %s1088_s26, 0  ;;  %p884_p3 = scmp.lt.s32.totalorder %s1088_s26, 2 }
  0x19   : > { %s1197_s17 = scalar_select %p31_p12, %s1084_s25, %s33_s16  }
  0x1a   : > { %p42_p5 = por %p41_p0, %p40_p13  ;;  %p1201_p7 = por %p180_p2, %p40_p13 }
  0x1b   : > { %1438 = sst [smem:[#allocation14_spill]] %s1197_s17  ;;  %s229_s19 = sand.u32 1, %s1084_s25  }
  0x1c   : > { %s824_s20 = sshll.u32 %s1088_s26, 7  ;;  %s812_s21 = sshll.u32 %s229_s19, 7 }
  0x1d   : > { %s1440_s0 = sld [smem:[#allocation15_spill]]  ;;  %s233_s8 = scalar_lea.vmem [#allocation3], %s812_s21 }
  0x1e   : > { %s241_s10 = sshll.u32 %s233_s8, 4  ;;  %p1212_p9 = pnand %p884_p3, %p42_p5  ;;  %s242_s10 = int_to_ptr.vmem [resolvable:$true] %s241_s10 }
  0x1f   : > { %s260_s13 = scalar_lea.hbm %s1422_s1, %s824_s20  ;;  %s255_s14 = scalar_lea.vmem [#allocation6], %s812_s21 }
  0x20   : > { %s1219_s2 = sshll.u32 %s255_s14, 4  ;;  %s261_s22 = sshll.u32 %s260_s13, 4  ;;  %s262_s22 = int_to_ptr.hbm [resolvable:$true] %s261_s22  ;;  %s264_s2 = int_to_ptr.vmem [resolvable:$true] %s1219_s2 }
  0x21   : > { %s230_s27 = scalar_lea.sflag [#allocation4], %s229_s19  ;;  %p958_p10 = pneg %p1212_p9 }
  0x23   : > { %s238_s30 = scalar_lea.hbm %s1440_s0, %s824_s20  ;;  %s961_s16 = scalar_lea.hbm %s1440_s0, 256 }
  0x24   : > { %s239_s7 = sshll.u32 %s238_s30, 4  ;;  %s240_s7 = int_to_ptr.hbm [resolvable:$true] %s239_s7 }
  0x25   : > { %s954_s30 = sshra.s32 %s240_s7, 4  ;;  %s955_s30 = int_to_ptr.hbm [resolvable:$true] %s954_s30 }
  0x26   : > { %s956_s8 = scalar_lea.hbm %s955_s30, 128  ;;  %p962_p0 = scmp.lt.s32.totalorder %s955_s30, %s1440_s0 }
  0x27   : > { %p957_p2 = scmp.ne.s32.totalorder %s955_s30, %s956_s8  ;;  %p963_p3 = scmp.lt.s32.totalorder %s961_s16, %s956_s8 }
  0x29   : > { %p959_p12 = pnand %p958_p10, %p957_p2  ;;  %p964_p5 = por %p963_p3, %p962_p0 }
  0x2b   : > { %p960_p13 = pneg %p959_p12 }
  0x2d   : > { %p965_p11 = pnand %p964_p5, %p960_p13 }
  0x2f   : > { %968 = shalt.err (!%p965_p11)
}
  0x30   : > { %s1442_s13 = smov 8   ;;  %s1443_s14 = smov 128  }
  0x31   : > { %875 = dma.hbm_to_vmem [thread:$0]  (!%p1212_p9), %s240_s7, 2048, %s242_s10, %s230_s27, %s1443_s14, %s1443_s14, %s1442_s13  }
  0x32   : > { %s251_s17 = sand.u32 1, %s1088_s26   ;;  %s984_s15 = sshra.s32 %s262_s22, 4  ;;  %s985_s15 = int_to_ptr.hbm [resolvable:$true] %s984_s15 }
  0x33   : > { %s252_s19 = scalar_lea.sflag [#allocation7], %s251_s17  ;;  %s986_s30 = scalar_lea.hbm %s985_s15, 128 }
  0x34   : > { %p987_p2 = scmp.ne.s32.totalorder %s985_s15, %s986_s30  ;;  %s991_s20 = scalar_lea.hbm %s1422_s1, 256 }
  0x35   : > { %p992_p13 = scmp.lt.s32.totalorder %s985_s15, %s1422_s1  ;;  %p993_p0 = scmp.lt.s32.totalorder %s991_s20, %s986_s30 }
  0x36   : > { %p989_p11 = pnand %p987_p2, %p958_p10 }
  0x37   : > { %p994_p3 = por %p993_p0, %p992_p13 }
  0x38   : > { %p990_p12 = pneg %p989_p11 }
  0x3a   : > { %p995_p5 = pnand %p994_p3, %p990_p12 }
  0x3c   : > { %998 = shalt.err (!%p995_p5)
}
  0x3d   : > { %878 = dma.hbm_to_vmem [thread:$0]  (!%p1212_p9), %s262_s22, 2048, %s264_s2, %s252_s19, %s1443_s14, %s1443_s14, %s1442_s13  }
  0x3e   : > { %275 = sbr.rel (%p1174_p8) target bundleno = 429 (0x1ad), region = 44  ;;  %s1256_s7 = sand.u32 (!%p1174_p8), 1, %s1080_s24  }
  0x3f   : > { %s819_s0 = sshll.u32 (!%p1174_p8), %s1256_s7, 7  ;;  %s278_s10 = scalar_lea.sflag (!%p1174_p8), [#allocation4], %s1256_s7 }
  0x40   : > { %s1260_s27 = scalar_lea.vmem (!%p1174_p8), [#allocation3], %s819_s0 }
  0x43   : > { %1059 = dma.done.wait (%p1161_p4), %s278_s10, 2048  }
  0x44   : > { %1061 = vsyncadd (%p1161_p4), %s278_s10, 4294965248  ;;  %s287_s2 = sand.u32 1, %s1152_s5   ;;  %s1267_s11 = scalar_lea.vmem [#allocation6], %s819_s0 }
  0x45   : > { %s288_s9 = scalar_lea.sflag [#allocation7], %s287_s2 }
  0x46   : > { %1063 = dma.done.wait (%p1161_p4), %s288_s9, 2048  }
  0x47   : > { %1065 = vsyncadd (%p1161_p4), %s288_s9, 4294965248 }
  0x48   : > { %1067 = dma.done.wait (%p47_p1), [#allocation7], 4096  }
  0x49   : > { %1069 = vsyncadd (%p47_p1), [#allocation7], 4294963200  ;;  %v379_v0 = vld [vmem:[#allocation8 + $0x78] sm:$0xff]  ;;  %v378_v1 = vld [vmem:[#allocation8 + $0x70] sm:$0xff]  ;;  %s598_s17 = sld [smem:[#allocation2]]  ;;  %vm637_vm0 = vcmask 130112   ;;  %s706_s30 = scalar_lea.hbm %s1427_s6, %s1152_s5 }
  0x4a   : > { %v395_v2 = vld [vmem:[#allocation8 + $0xf8] sm:$0xff]  ;;  %400 = vmatpush.msra.mxu0 %v379_v0  ;;  %826 = vmatpush.msra.mxu2 %v379_v0  ;;  %v394_v3 = vld [vmem:[#allocation8 + $0xf0] sm:$0xff]  ;;  %v377_v4 = vld [vmem:[#allocation8 + $0x68] sm:$0xff]  ;;  %vm641_vm1 = vcmask 195712   ;;  %vm645_vm2 = vcmask 261312   ;;  %vm649_vm3 = vcmask 326912  }
  0x4b   : > { %465 = vmatpush.msra.mxu1 %v395_v2  ;;  %842 = vmatpush.msra.mxu3 %v395_v2  ;;  %v393_v5 = vld [vmem:[#allocation8 + $0xe8] sm:$0xff]  ;;  %v376_v6 = vld [vmem:[#allocation8 + $0x60] sm:$0xff]  ;;  %v375_v8 = vld [vmem:[#allocation8 + $0x58] sm:$0xff]  ;;  %vm653_vm4 = vcmask 392512   ;;  %vm657_vm5 = vcmask 458112   ;;  %vm661_vm6 = vcmask 523712  }
  0x4c   : > { %401 = vmatpush.msra.mxu0 %v378_v1  ;;  %827 = vmatpush.msra.mxu2 %v378_v1  ;;  %v392_v7 = vld [vmem:[#allocation8 + $0xe0] sm:$0xff]  ;;  %v391_v9 = vld [vmem:[#allocation8 + $0xd8] sm:$0xff]  ;;  %v374_v10 = vld [vmem:[#allocation8 + $0x50] sm:$0xff]  ;;  %vm665_vm7 = vcmask 589312   ;;  %vm669_vm8 = vcmask 654912   ;;  %vm673_vm9 = vcmask 720512  }
  0x4d   : > { %466 = vmatpush.msra.mxu1 %v394_v3  ;;  %843 = vmatpush.msra.mxu3 %v394_v3  ;;  %v390_v11 = vld [vmem:[#allocation8 + $0xd0] sm:$0xff]  ;;  %v373_v12 = vld [vmem:[#allocation8 + $0x48] sm:$0xff]  ;;  %v372_v14 = vld [vmem:[#allocation8 + $0x40] sm:$0xff]  ;;  %vm677_vm10 = vcmask 786112   ;;  %vm681_vm11 = vcmask 851712   ;;  %vm685_vm12 = vcmask 917312  }
  0x4e   : > { %402 = vmatpush.msra.mxu0 %v377_v4  ;;  %828 = vmatpush.msra.mxu2 %v377_v4  ;;  %v389_v13 = vld [vmem:[#allocation8 + $0xc8] sm:$0xff]  ;;  %v388_v15 = vld [vmem:[#allocation8 + $0xc0] sm:$0xff]  ;;  %v371_v16 = vld [vmem:[#allocation8 + $0x38] sm:$0xff]  ;;  %vm689_vm13 = vcmask 982912   ;;  %s329_s8 = scalar_lea.vmem [#allocation9], %s1256_s7  ;;  %s710_s20 = sshll.u32 %s706_s30, 4  ;;  %s711_s20 = int_to_ptr.hbm [resolvable:$true] %s710_s20 }
  0x4f   : > { %467 = vmatpush.msra.mxu1 %v393_v5  ;;  %844 = vmatpush.msra.mxu3 %v393_v5  ;;  %v387_v17 = vld [vmem:[#allocation8 + $0xb8] sm:$0xff]  ;;  %v370_v18 = vld [vmem:[#allocation8 + $0x30] sm:$0xff]  ;;  %v369_v20 = vld [vmem:[#allocation8 + $0x28] sm:$0xff]  ;;  %s708_s16 = sshll.u32 %s329_s8, 4  ;;  %vm693_vm14 = vcmask 1048512   ;;  %s698_s5 = scalar_lea.sflag [#allocation5], %s1256_s7  ;;  %s709_s16 = int_to_ptr.vmem [resolvable:$true] %s708_s16 }
  0x50   : > { %403 = vmatpush.msra.mxu0 %v376_v6  ;;  %829 = vmatpush.msra.mxu2 %v376_v6  ;;  %v386_v19 = vld [vmem:[#allocation8 + $0xb0] sm:$0xff]  ;;  %v385_v21 = vld [vmem:[#allocation8 + $0xa8] sm:$0xff]  ;;  %v368_v22 = vld [vmem:[#allocation8 + $0x20] sm:$0xff]  ;;  %s1028_s21 = sshra.s32 %s711_s20, 4  ;;  %s1034_s2 = scalar_lea.hbm %s1427_s6, 2  ;;  %s1029_s21 = int_to_ptr.hbm [resolvable:$true] %s1028_s21 }
  0x51   : > { %468 = vmatpush.msra.mxu1 %v392_v7  ;;  %845 = vmatpush.msra.mxu3 %v392_v7  ;;  %v384_v23 = vld [vmem:[#allocation8 + $0xa0] sm:$0xff]  ;;  %v367_v24 = vld [vmem:[#allocation8 + $0x18] sm:$0xff]  ;;  %v366_v26 = vld [vmem:[#allocation8 + $0x10] sm:$0xff]  ;;  %s1030_s0 = scalar_lea.hbm %s1029_s21, 1  ;;  %p1035_p9 = scmp.lt.s32.totalorder %s1029_s21, %s1427_s6 }
  0x52   : > { %404 = vmatpush.msra.mxu0 %v375_v8  ;;  %830 = vmatpush.msra.mxu2 %v375_v8  ;;  %v383_v25 = vld [vmem:[#allocation8 + $0x98] sm:$0xff]  ;;  %v382_v27 = vld [vmem:[#allocation8 + $0x90] sm:$0xff]  ;;  %v365_v28 = vld [vmem:[#allocation8 + $0x8] sm:$0xff]  ;;  %p1031_p1 = scmp.ne.s32.totalorder %s1029_s21, %s1030_s0  ;;  %p1036_p10 = scmp.lt.s32.totalorder %s1034_s2, %s1030_s0 }
  0x53   : > { %469 = vmatpush.msra.mxu1 %v391_v9  ;;  %846 = vmatpush.msra.mxu3 %v391_v9  ;;  %v381_v29 = vld [vmem:[#allocation8 + $0x88] sm:$0xff]  ;;  %v364_v30 = vld [vmem:[#allocation8] sm:$0xff]  ;;  %v334_v40 = vld [vmem:[%s1260_s27 + $0x10] sm:$0xff] }
  0x54   : > { %405 = vmatpush.msra.mxu0 %v374_v10  ;;  %831 = vmatpush.msra.mxu2 %v374_v10  ;;  %v332_v31 = vld [vmem:[%s1260_s27] sm:$0xff]  ;;  %v333_v36 = vld [vmem:[%s1260_s27 + $0x8] sm:$0xff]  ;;  %v342_v41 = vld [vmem:[%s1260_s27 + $0x50] sm:$0xff]  ;;  %p1032_p4 = pnand %p1031_p1, %p1201_p7  ;;  %p1037_p2 = por %p1036_p10, %p1035_p9 }
  0x55   : > { %470 = vmatpush.msra.mxu1 %v390_v11  ;;  %847 = vmatpush.msra.mxu3 %v390_v11  ;;  %v380_v32 = vld [vmem:[#allocation8 + $0x80] sm:$0xff]  ;;  %v341_v37 = vld [vmem:[%s1260_s27 + $0x48] sm:$0xff]  ;;  %v350_v42 = vld [vmem:[%s1267_s11 + $0x10] sm:$0xff] }
  0x56   : > { %406 = vmatpush.msra.mxu0 %v373_v12  ;;  %832 = vmatpush.msra.mxu2 %v373_v12  ;;  %v340_v33 = vld [vmem:[%s1260_s27 + $0x40] sm:$0xff]  ;;  %v349_v38 = vld [vmem:[%s1267_s11 + $0x8] sm:$0xff]  ;;  %v358_v43 = vld [vmem:[%s1267_s11 + $0x50] sm:$0xff]  ;;  %p1033_p8 = pneg %p1032_p4 }
  0x57   : > { %471 = vmatpush.msra.mxu1 %v389_v13  ;;  %848 = vmatpush.msra.mxu3 %v389_v13  ;;  %v348_v34 = vld [vmem:[%s1267_s11] sm:$0xff]  ;;  %v357_v39 = vld [vmem:[%s1267_s11 + $0x48] sm:$0xff]  ;;  %v335_v44 = vld [vmem:[%s1260_s27 + $0x18] sm:$0xff] }
  0x58   : > { %407 = vmatpush.msra.mxu0 %v372_v14  ;;  %833 = vmatpush.msra.mxu2 %v372_v14  ;;  %v356_v35 = vld [vmem:[%s1267_s11 + $0x40] sm:$0xff]  ;;  %v351_v45 = vld [vmem:[%s1267_s11 + $0x18] sm:$0xff]  ;;  %v337_v52 = vld [vmem:[%s1260_s27 + $0x28] sm:$0xff]  ;;  %p1038_p11 = pnand %p1037_p2, %p1033_p8 }
  0x59   : > { %472 = vmatpush.msra.mxu1 %v388_v15  ;;  %849 = vmatpush.msra.mxu3 %v388_v15  ;;  %v343_v46 = vld [vmem:[%s1260_s27 + $0x58] sm:$0xff]  ;;  %v336_v48 = vld [vmem:[%s1260_s27 + $0x20] sm:$0xff]  ;;  %v353_v53 = vld [vmem:[%s1267_s11 + $0x28] sm:$0xff] }
  0x5a   : > { %408 = vmatpush.msra.mxu0 %v371_v16  ;;  %834 = vmatpush.msra.mxu2 %v371_v16  ;;  %v359_v47 = vld [vmem:[%s1267_s11 + $0x58] sm:$0xff]  ;;  %v352_v49 = vld [vmem:[%s1267_s11 + $0x20] sm:$0xff]  ;;  %v345_v54 = vld [vmem:[%s1260_s27 + $0x68] sm:$0xff] }
  0x5b   : > { %473 = vmatpush.msra.mxu1 %v387_v17  ;;  %850 = vmatpush.msra.mxu3 %v387_v17  ;;  %v344_v50 = vld [vmem:[%s1260_s27 + $0x60] sm:$0xff]  ;;  %v361_v55 = vld [vmem:[%s1267_s11 + $0x68] sm:$0xff]  ;;  %v338_v56 = vld [vmem:[%s1260_s27 + $0x30] sm:$0xff] }
  0x5c   : > { %409 = vmatpush.msra.mxu0 %v370_v18  ;;  %835 = vmatpush.msra.mxu2 %v370_v18  ;;  %v360_v51 = vld [vmem:[%s1267_s11 + $0x60] sm:$0xff]  ;;  %v354_v57 = vld [vmem:[%s1267_s11 + $0x30] sm:$0xff]  ;;  %v339_v60 = vld [vmem:[%s1260_s27 + $0x38] sm:$0xff] }
  0x5d   : > { %474 = vmatpush.msra.mxu1 %v386_v19  ;;  %851 = vmatpush.msra.mxu3 %v386_v19  ;;  %v346_v58 = vld [vmem:[%s1260_s27 + $0x70] sm:$0xff]  ;;  %v355_v61 = vld [vmem:[%s1267_s11 + $0x38] sm:$0xff]  ;;  %v1312_v0 = vld [vmem:[%s1424_s3] ss:$0 sm:$0xff] }
  0x5e   : > { %410 = vmatpush.msra.mxu0 %v369_v20  ;;  %836 = vmatpush.msra.mxu2 %v369_v20  ;;  %v362_v59 = vld [vmem:[%s1267_s11 + $0x70] sm:$0xff]  ;;  %v347_v62 = vld [vmem:[%s1260_s27 + $0x78] sm:$0xff]  ;;  %v1318_v5 = vld [vmem:[%s1425_s4] ss:$0 sm:$0xff] }
  0x5f   : > { %475 = vmatpush.msra.mxu1 %v385_v21  ;;  %852 = vmatpush.msra.mxu3 %v385_v21  ;;  %v363_v63 = vld [vmem:[%s1267_s11 + $0x78] sm:$0xff] }
  0x60   : > { %411 = vmatpush.msra.mxu0 %v368_v22  ;;  %837 = vmatpush.msra.mxu2 %v368_v22 }
  0x61   : > { %476 = vmatpush.msra.mxu1 %v384_v23  ;;  %853 = vmatpush.msra.mxu3 %v384_v23 }
  0x62   : > { %412 = vmatpush.msra.mxu0 %v367_v24  ;;  %838 = vmatpush.msra.mxu2 %v367_v24 }
  0x63   : > { %477 = vmatpush.msra.mxu1 %v383_v25  ;;  %854 = vmatpush.msra.mxu3 %v383_v25 }
  0x64   : > { %413 = vmatpush.msra.mxu0 %v366_v26  ;;  %839 = vmatpush.msra.mxu2 %v366_v26 }
  0x65   : > { %478 = vmatpush.msra.mxu1 %v382_v27  ;;  %855 = vmatpush.msra.mxu3 %v382_v27 }
  0x66   : > { %414 = vmatpush.msra.mxu0 %v365_v28  ;;  %840 = vmatpush.msra.mxu2 %v365_v28 }
  0x67   : > { %479 = vmatpush.msra.mxu1 %v381_v29  ;;  %856 = vmatpush.msra.mxu3 %v381_v29 }
  0x68   : > { %415 = vmatpush.msra.mxu0 %v364_v30  ;;  %841 = vmatpush.msra.mxu2 %v364_v30 }
  0x69   : > { %416 = vmatmul.f32.vlgmr.msra.gmra.mxu0 %v332_v31  ;;  %480 = vmatpush.msra.mxu1 %v380_v32 }
  0x6a   : > { %440 = vmatmul.f32.vlgmr.msra.gmra.mxu2 %v340_v33  ;;  %481 = vmatmul.f32.vlgmr.msra.gmra.mxu1 %v348_v34 }
  0x6b   : > { %857 = vmatpush.msra.mxu3 %v380_v32 }
  0x6c   : > { %505 = vmatmul.f32.vlgmr.msra.gmra.mxu3 %v356_v35 }
  0x71   : > { %419 = vmatmul.f32.gmra.mxu0 %v333_v36 }
  0x72   : > { %443 = vmatmul.f32.gmra.mxu2 %v341_v37  ;;  %484 = vmatmul.f32.gmra.mxu1 %v349_v38 }
  0x74   : > { %508 = vmatmul.f32.gmra.mxu3 %v357_v39 }
  0x79   : > { %422 = vmatmul.f32.gmra.mxu0 %v334_v40 }
  0x7a   : > { %446 = vmatmul.f32.gmra.mxu2 %v342_v41  ;;  %487 = vmatmul.f32.gmra.mxu1 %v350_v42 }
  0x7c   : > { %511 = vmatmul.f32.gmra.mxu3 %v358_v43 }
  0x81   : > { %425 = vmatmul.f32.gmra.mxu0 %v335_v44 }
  0x82   : > { %490 = vmatmul.f32.gmra.mxu1 %v351_v45  ;;  %449 = vmatmul.f32.gmra.mxu2 %v343_v46 }
  0x84   : > { %514 = vmatmul.f32.gmra.mxu3 %v359_v47 }
  0x89   : > { %428 = vmatmul.f32.gmra.mxu0 %v336_v48 }
  0x8a   : > { %493 = vmatmul.f32.gmra.mxu1 %v352_v49  ;;  %452 = vmatmul.f32.gmra.mxu2 %v344_v50 }
  0x8c   : > { %517 = vmatmul.f32.gmra.mxu3 %v360_v51 }
  0x91   : > { %431 = vmatmul.f32.gmra.mxu0 %v337_v52 }
  0x92   : > { %496 = vmatmul.f32.gmra.mxu1 %v353_v53  ;;  %455 = vmatmul.f32.gmra.mxu2 %v345_v54 }
  0x94   : > { %520 = vmatmul.f32.gmra.mxu3 %v361_v55 }
  0x99   : > { %434 = vmatmul.f32.gmra.mxu0 %v338_v56 }
  0x9a   : > { %499 = vmatmul.f32.gmra.mxu1 %v354_v57  ;;  %458 = vmatmul.f32.gmra.mxu2 %v346_v58 }
  0x9c   : > { %523 = vmatmul.f32.gmra.mxu3 %v362_v59 }
  0xa1   : > { %437 = vmatmul.f32.gmra.mxu0 %v339_v60 }
  0xa2   : > { %502 = vmatmul.f32.gmra.mxu1 %v355_v61  ;;  %461 = vmatmul.f32.gmra.mxu2 %v347_v62 }
  0xa4   : > { %526 = vmatmul.f32.gmra.mxu3 %v363_v63 }
  0xe6   : > { %v417_v1 = vpop.f32.mrf.mxu0 }
  0xe7   : > { %v418_v2 = vadd.f32 %v1312_v0, %v417_v1  ;;  %v482_v3 = vpop.f32.mrf.mxu1 }
  0xe9   : > { %v483_v4 = vadd.f32 %v482_v3, %v418_v2 }
  0xeb   : > { %v530_v6 = vmax.f32 %v483_v4, 0.0 }
  0xed   : > { %v441_v7 = vpop.f32.mrf.mxu2  ;;  %v550_v8 = vmul.f32 %v1318_v5, %v530_v6 }
  0xee   : > { %v420_v9 = vpop.f32.mrf.mxu0  ;;  %v442_v10 = vadd.f32 %v1312_v0, %v441_v7 }
  0xef   : > { %v421_v11 = vadd.f32 %v1312_v0, %v420_v9  ;;  %566 = vadd.xlane.f32.xlu0 %v550_v8  ;;  %v485_v12 = vpop.f32.mrf.mxu1  ;;  %v506_v13 = vpop.f32.mrf.mxu3 }
  0xf0   : > { %v507_v14 = vadd.f32 %v506_v13, %v442_v10 }
  0xf1   : > { %v486_v15 = vadd.f32 %v485_v12, %v421_v11 }
  0xf2   : > { %v538_v16 = vmax.f32 %v507_v14, 0.0 }
  0xf3   : > { %v531_v17 = vmax.f32 %v486_v15, 0.0 }
  0xf4   : > { %v558_v18 = vmul.f32 %v1318_v5, %v538_v16 }
  0xf5   : > { %v444_v19 = vpop.f32.mrf.mxu2  ;;  %v551_v20 = vmul.f32 %v1318_v5, %v531_v17 }
  0xf6   : > { %v423_v21 = vpop.f32.mrf.mxu0  ;;  %v445_v22 = vadd.f32 %v1312_v0, %v444_v19  ;;  %582 = vadd.xlane.f32.xlu2 %v558_v18 }
  0xf7   : > { %v424_v23 = vadd.f32 %v1312_v0, %v423_v21  ;;  %568 = vadd.xlane.f32.xlu0 %v551_v20  ;;  %v488_v24 = vpop.f32.mrf.mxu1  ;;  %v509_v25 = vpop.f32.mrf.mxu3 }
  0xf8   : > { %v510_v26 = vadd.f32 %v509_v25, %v445_v22 }
  0xf9   : > { %v489_v27 = vadd.f32 %v488_v24, %v424_v23 }
  0xfa   : > { %v539_v28 = vmax.f32 %v510_v26, 0.0 }
  0xfb   : > { %v532_v29 = vmax.f32 %v489_v27, 0.0 }
  0xfc   : > { %v559_v30 = vmul.f32 %v1318_v5, %v539_v28 }
  0xfd   : > { %v447_v31 = vpop.f32.mrf.mxu2  ;;  %v552_v32 = vmul.f32 %v1318_v5, %v532_v29 }
  0xfe   : > { %v426_v33 = vpop.f32.mrf.mxu0  ;;  %v448_v34 = vadd.f32 %v1312_v0, %v447_v31 }
  0xff   : > { %570 = vadd.xlane.f32.xlu1 %v552_v32  ;;  %v491_v35 = vpop.f32.mrf.mxu1  ;;  %v512_v36 = vpop.f32.mrf.mxu3  ;;  %584 = vadd.xlane.f32.xlu0 %v559_v30  ;;  %v427_v38 = vadd.f32 %v1312_v0, %v426_v33 }
 0x100   : > { %v513_v37 = vadd.f32 %v512_v36, %v448_v34 }
 0x101   : > { %v492_v41 = vadd.f32 %v491_v35, %v427_v38 }
 0x102   : > { %v540_v39 = vmax.f32 %v513_v37, 0.0 }
 0x103   : > { %v533_v47 = vmax.f32 %v492_v41, 0.0 }
 0x104   : > { %v560_v40 = vmul.f32 %v1318_v5, %v540_v39 }
 0x105   : > { %v450_v42 = vpop.f32.mrf.mxu2  ;;  %v553_v51 = vmul.f32 %v1318_v5, %v533_v47 }
 0x106   : > { %v429_v43 = vpop.f32.mrf.mxu0  ;;  %v451_v57 = vadd.f32 %v1312_v0, %v450_v42  ;;  %v632_v42 = vlaneseq }
 0x107   : > { %v430_v44 = vadd.f32 %v1312_v0, %v429_v43  ;;  %586 = vadd.xlane.f32.xlu1 %v560_v40  ;;  %v494_v45 = vpop.f32.mrf.mxu1  ;;  %v515_v46 = vpop.f32.mrf.mxu3 }
 0x108   : > { %v516_v60 = vadd.f32 %v515_v46, %v451_v57 }
 0x109   : > { %v495_v48 = vadd.f32 %v494_v45, %v430_v44  ;;  %v1353_v45 = vstv %s598_s17 }
 0x10a   : > { %v541_v7 = vmax.f32 %v516_v60, 0.0 }
 0x10b   : > { %v534_v49 = vmax.f32 %v495_v48, 0.0 }
 0x10c   : > { %v561_v14 = vmul.f32 %v1318_v5, %v541_v7 }
 0x10d   : > { %v554_v50 = vmul.f32 %v1318_v5, %v534_v49  ;;  %v453_v52 = vpop.f32.mrf.mxu2 }
 0x10e   : > { %v432_v53 = vpop.f32.mrf.mxu0  ;;  %v454_v8 = vadd.f32 %v1312_v0, %v453_v52 }
 0x10f   : > { %v433_v54 = vadd.f32 %v1312_v0, %v432_v53  ;;  %574 = vadd.xlane.f32.xlu2 %v554_v50  ;;  %572 = vadd.xlane.f32.xlu1 %v553_v51  ;;  %v497_v55 = vpop.f32.mrf.mxu1  ;;  %v518_v56 = vpop.f32.mrf.mxu3 }
 0x110   : > { %v519_v13 = vadd.f32 %v518_v56, %v454_v8 }
 0x111   : > { %v498_v58 = vadd.f32 %v497_v55, %v433_v54 }
 0x112   : > { %v542_v23 = vmax.f32 %v519_v13, 0.0 }
 0x113   : > { %v535_v59 = vmax.f32 %v498_v58, 0.0 }
 0x114   : > { %v562_v29 = vmul.f32 %v1318_v5, %v542_v23 }
 0x115   : > { %v555_v61 = vmul.f32 %v1318_v5, %v535_v59  ;;  %v456_v62 = vpop.f32.mrf.mxu2 }
 0x116   : > { %v435_v63 = vpop.f32.mrf.mxu0  ;;  %v457_v1 = vadd.f32 %v1312_v0, %v456_v62 }
 0x117   : > { %v436_v2 = vadd.f32 %v1312_v0, %v435_v63  ;;  %576 = vadd.xlane.f32.xlu2 %v555_v61  ;;  %v500_v3 = vpop.f32.mrf.mxu1  ;;  %v521_v4 = vpop.f32.mrf.mxu3 }
 0x118   : > { %v522_v6 = vadd.f32 %v521_v4, %v457_v1 }
 0x119   : > { %v501_v9 = vadd.f32 %v500_v3, %v436_v2 }
 0x11a   : > { %v543_v10 = vmax.f32 %v522_v6, 0.0 }
 0x11b   : > { %v536_v11 = vmax.f32 %v501_v9, 0.0 }
 0x11c   : > { %v563_v12 = vmul.f32 %v1318_v5, %v543_v10 }
 0x11d   : > { %v556_v15 = vmul.f32 %v1318_v5, %v536_v11  ;;  %v459_v16 = vpop.f32.mrf.mxu2 }
 0x11e   : > { %v438_v17 = vpop.f32.mrf.mxu0  ;;  %v460_v18 = vadd.f32 %v1312_v0, %v459_v16 }
 0x11f   : > { %v439_v19 = vadd.f32 %v1312_v0, %v438_v17  ;;  %588 = vadd.xlane.f32.xlu2 %v561_v14  ;;  %578 = vadd.xlane.f32.xlu0 %v556_v15  ;;  %v503_v20 = vpop.f32.mrf.mxu1  ;;  %v524_v21 = vpop.f32.mrf.mxu3 }
 0x120   : > { %v525_v22 = vadd.f32 %v524_v21, %v460_v18 }
 0x121   : > { %v504_v24 = vadd.f32 %v503_v20, %v439_v19 }
 0x122   : > { %v544_v25 = vmax.f32 %v525_v22, 0.0 }
 0x123   : > { %v537_v26 = vmax.f32 %v504_v24, 0.0 }
 0x124   : > { %v564_v27 = vmul.f32 %v1318_v5, %v544_v25 }
 0x125   : > { %v557_v28 = vmul.f32 %v1318_v5, %v537_v26  ;;  %v462_v30 = vpop.f32.mrf.mxu2 }
 0x126   : > { %v463_v31 = vadd.f32 %v1312_v0, %v462_v30  ;;  %v1351_v0 = vand.u32 127, %v632_v42 }
 0x127   : > { %580 = vadd.xlane.f32.xlu1 %v557_v28  ;;  %590 = vadd.xlane.f32.xlu0 %v562_v29  ;;  %v527_v32 = vpop.f32.mrf.mxu3 }
 0x128   : > { %594 = vadd.xlane.f32.xlu2 %v564_v27  ;;  %v528_v33 = vadd.f32 %v527_v32, %v463_v31  ;;  %v635_v47 = vadd.s32 4294967288, %v1351_v0  ;;  %v639_v48 = vadd.s32 4294967280, %v1351_v0  ;;  %v643_v51 = vadd.s32 4294967272, %v1351_v0 }
 0x129   : > { %v647_v56 = vadd.s32 4294967264, %v1351_v0  ;;  %v651_v60 = vadd.s32 4294967256, %v1351_v0  ;;  %v655_v62 = vadd.s32 4294967248, %v1351_v0  ;;  %v663_v3 = vadd.s32 4294967232, %v1351_v0 }
 0x12a   : > { %v545_v34 = vmax.f32 %v528_v33, 0.0  ;;  %v659_v9 = vadd.s32 4294967240, %v1351_v0  ;;  %v667_v11 = vadd.s32 4294967224, %v1351_v0  ;;  %v671_v16 = vadd.s32 4294967216, %v1351_v0 }
 0x12b   : > { %v675_v20 = vadd.s32 4294967208, %v1351_v0  ;;  %v679_v28 = vadd.s32 4294967200, %v1351_v0 }
 0x12c   : > { %v565_v35 = vmul.f32 %v1318_v5, %v545_v34 }
 0x12f   : > { %592 = vadd.xlane.f32.xlu1 %v563_v12  ;;  %596 = vadd.xlane.f32.xlu0 %v565_v35  ;;  %v683_v35 = vadd.s32 4294967192, %v1351_v0 }
 0x162   : > { %v567_v36 = vpop.xlane.xlu0 %566 }
 0x163   : > { %v600_v50 = vadd.f32 %v1353_v45, %v567_v36  ;;  %v691_v36 = vadd.s32 4294967176, %v1351_v0 }
 0x165   : > { %v634_v58 = vperm.slane %v600_v50, %v1351_v0 }
 0x169   : > { %v583_v38 = vpop.xlane.xlu2 %582 }
 0x16a   : > { %v569_v39 = vpop.xlane.xlu0 %568  ;;  %v608_v10 = vadd.f32 %v1353_v45, %v583_v38  ;;  %v687_v38 = vadd.s32 4294967184, %v1351_v0 }
 0x16b   : > { %v601_v5 = vadd.f32 %v1353_v45, %v569_v39 }
 0x16c   : > { %v664_v24 = vperm.slane %v608_v10, %v663_v3 }
 0x16d   : > { %v636_v54 = vperm.slane %v601_v5, %v635_v47 }
 0x16f   : > { %v638_v1 = vsel %vm637_vm0, %v636_v54, %v634_v58 }
 0x172   : > { %v571_v37 = vpop.xlane.xlu1 %570  ;;  %v585_v43 = vpop.xlane.xlu0 %584 }
 0x173   : > { %v602_v49 = vadd.f32 %v1353_v45, %v571_v37  ;;  %v609_v15 = vadd.f32 %v1353_v45, %v585_v43 }
 0x175   : > { %v640_v55 = vperm.slane %v602_v49, %v639_v48  ;;  %v668_v26 = vperm.slane %v609_v15, %v667_v11 }
 0x177   : > { %v642_v4 = vsel %vm641_vm1, %v640_v55, %v638_v1 }
 0x17a   : > { %v587_v41 = vpop.xlane.xlu1 %586 }
 0x17b   : > { %v610_v18 = vadd.f32 %v1353_v45, %v587_v41 }
 0x17d   : > { %v672_v30 = vperm.slane %v610_v18, %v671_v16 }
 0x182   : > { %v575_v40 = vpop.xlane.xlu2 %574  ;;  %v573_v46 = vpop.xlane.xlu1 %572 }
 0x183   : > { %v603_v52 = vadd.f32 %v1353_v45, %v573_v46  ;;  %v604_v57 = vadd.f32 %v1353_v45, %v575_v40 }
 0x185   : > { %v644_v59 = vperm.slane %v603_v52, %v643_v51  ;;  %v648_v6 = vperm.slane %v604_v57, %v647_v56 }
 0x187   : > { %v646_v7 = vsel %vm645_vm2, %v644_v59, %v642_v4 }
 0x188   : > { %v650_v19 = vsel %vm649_vm3, %v648_v6, %v646_v7 }
 0x18a   : > { %v577_v44 = vpop.xlane.xlu2 %576 }
 0x18b   : > { %v605_v61 = vadd.f32 %v1353_v45, %v577_v44 }
 0x18d   : > { %v652_v8 = vperm.slane %v605_v61, %v651_v60 }
 0x18f   : > { %v654_v21 = vsel %vm653_vm4, %v652_v8, %v650_v19 }
 0x192   : > { %v579_v53 = vpop.xlane.xlu0 %578  ;;  %v589_v2 = vpop.xlane.xlu2 %588 }
 0x193   : > { %v606_v63 = vadd.f32 %v1353_v45, %v579_v53  ;;  %v611_v22 = vadd.f32 %v1353_v45, %v589_v2 }
 0x195   : > { %v656_v12 = vperm.slane %v606_v63, %v655_v62  ;;  %v676_v33 = vperm.slane %v611_v22, %v675_v20 }
 0x197   : > { %v658_v25 = vsel %vm657_vm5, %v656_v12, %v654_v21 }
 0x19a   : > { %v581_v13 = vpop.xlane.xlu1 %580  ;;  %v591_v14 = vpop.xlane.xlu0 %590 }
 0x19b   : > { %v607_v17 = vadd.f32 %v1353_v45, %v581_v13  ;;  %v595_v29 = vpop.xlane.xlu2 %594  ;;  %v612_v32 = vadd.f32 %v1353_v45, %v591_v14 }
 0x19c   : > { %v614_v39 = vadd.f32 %v1353_v45, %v595_v29 }
 0x19d   : > { %v660_v23 = vperm.slane %v607_v17, %v659_v9  ;;  %v680_v46 = vperm.slane %v612_v32, %v679_v28 }
 0x19e   : > { %v688_v48 = vperm.slane %v614_v39, %v687_v38 }
 0x19f   : > { %v662_v27 = vsel %vm661_vm6, %v660_v23, %v658_v25 }
 0x1a0   : > { %v666_v31 = vsel %vm665_vm7, %v664_v24, %v662_v27 }
 0x1a1   : > { %v670_v34 = vsel %vm669_vm8, %v668_v26, %v666_v31 }
 0x1a2   : > { %v674_v37 = vsel %vm673_vm9, %v672_v30, %v670_v34  ;;  %v593_v40 = vpop.xlane.xlu1 %592  ;;  %v597_v41 = vpop.xlane.xlu0 %596 }
 0x1a3   : > { %v678_v42 = vsel %vm677_vm10, %v676_v33, %v674_v37  ;;  %v613_v43 = vadd.f32 %v1353_v45, %v593_v40  ;;  %v615_v44 = vadd.f32 %v1353_v45, %v597_v41 }
 0x1a4   : > { %v682_v5 = vsel %vm681_vm11, %v680_v46, %v678_v42 }
 0x1a5   : > { %v684_v47 = vperm.slane %v613_v43, %v683_v35  ;;  %v692_v0 = vperm.slane %v615_v44, %v691_v36 }
 0x1a7   : > { %v686_v49 = vsel %vm685_vm12, %v684_v47, %v682_v5 }
 0x1a8   : > { %v690_v50 = vsel %vm689_vm13, %v688_v48, %v686_v49 }
 0x1a9   : > { %v694_v51 = vsel %vm693_vm14, %v692_v0, %v690_v50 }
 0x1aa   : > { %696 = vst [vmem:[%s329_s8] sm:$0x1] %v694_v51 }
 0x1ab   : > { %1041 = shalt.err (!%p1038_p11)
}
 0x1ac   : > { %866 = dma.vmem_to_hbm [thread:$0]  (%p1201_p7), %s709_s16, 16, %s711_s20, %s698_s5  }
 0x1ad PF: > { %s722_s7 = sand.u32 1, %s1076_s23   ;;  %p1444_p12 = scmp.ge.s32.totalorder %s1088_s26, 2 }
 0x1ae   : > { %s723_s28 = scalar_lea.sflag [#allocation5], %s722_s7 }
 0x1af   : > { %p880_p13 = pnand %p1444_p12, %p1166_p6 }
 0x1b1   : > { %p881_p0 = pneg %p880_p13 }
 0x1b3   : > { %1071 = dma.done.wait (%p881_p0), %s723_s28, 16  }
 0x1b4   : > { %1073 = vsyncadd (%p881_p0), %s723_s28, 4294967280  ;;  %s1445_s22 = sld [smem:[#allocation14_spill]]  ;;  %p23_p3 = scmp.ge.s32.totalorder %s1184_s12, 4  }
 0x1b5   : > { %s1446_s23 = smov %s1080_s24  ;;  %s1447_s24 = smov %s1084_s25 }
 0x1b6   : > { %s1449_s26 = smov %s1184_s12  ;;  %25 = sbr.rel (!%p23_p3) target bundleno = 11 (0xb), region = 106 }
 0x1ba   : > { %s1448_s25 = smov %s1445_s22 }
 0x1bb   :  { %728 = vsyncpa [#allocation4], 1 }
 0x1bc   :  { %730 = vsyncpa [#allocation4 + $0x1], 1 }
 0x1bd   :  { %731 = vsyncpa [#allocation7], 1 }
 0x1be   :  { %733 = vsyncpa [#allocation7 + $0x1], 1 }
 0x1bf   :  { %734 = vsyncpa [#allocation5], 1 }
 0x1c0   :  { %736 = vsyncpa [#allocation5 + $0x1], 1 }

</bundles_post_ra>
